<compile_context>
chip_gen: v6e
topology: v6e:2x2x1
jax: 0.10.0
libtpu: 0.0.40
codegen_flags: <defaults>
</compile_context>

<pallas_src>
import numpy as np
import jax
import jax.numpy as jnp
from jax.experimental import pallas as pl
from jax.experimental.pallas import tpu as pltpu

# ----------------- module "__init__" parameters (deterministic) -----------------
SAMPLE_RATE = 16000
WINDOW_LENGTH = 256
HOP_LENGTH = 128
FFT_LENGTH = 1 << int(np.ceil(np.log2(WINDOW_LENGTH)))   # fft_length(window_length) = 256
NUM_BINS = FFT_LENGTH // 2 + 1                            # rFFT bins = 129
NUM_MEL_BINS = 64
MIN_HZ, MAX_HZ = 125.0, 7500.0
MEL_SCALING = 1127.0
MEL_BREAK_HZ = 700.0
HZ_TO_MEL_BASE = np.e
LOG_OFFSET = 1e-3

# Kernel tiling / lane padding
MAX_TB = 128                   # max time-frame tile (fills MXU M dim for long signals)
NB_PAD = 256                   # 129 rFFT bins padded to a clean lane multiple
NM_PAD = 128                   # 64 mel bins padded to a lane-dense output width

assert FFT_LENGTH == 2 * HOP_LENGTH, "in-kernel framing assumes fft_length == 2*hop_length"


def _hertz_to_mel(f):
    return MEL_SCALING * (np.log(1.0 + f / MEL_BREAK_HZ) / np.log(HZ_TO_MEL_BASE))


def _mel_filterbank(num_spectrogram_bins):
    nyquist = SAMPLE_RATE / 2.0
    bins_hz = np.linspace(0.0, nyquist, num_spectrogram_bins)
    min_mel, max_mel = _hertz_to_mel(np.array([MIN_HZ, MAX_HZ]))
    bins_mel = _hertz_to_mel(bins_hz)
    bands = np.linspace(min_mel, max_mel, NUM_MEL_BINS + 2)
    fb = np.empty((num_spectrogram_bins, NUM_MEL_BINS), dtype=np.float64)
    for i in range(NUM_MEL_BINS):
        lo, c, hi = bands[i:i + 3]
        lower = (bins_mel - lo) / (c - lo)
        upper = (hi - bins_mel) / (hi - c)
        fb[:, i] = np.maximum(0.0, np.minimum(lower, upper))
    fb[0, :] = 0.0
    return fb


def _build_constants():
    # Periodic Hann window (librosa 'hann', fftbins=True); win_length == n_fft here.
    n = np.arange(WINDOW_LENGTH)
    hann = 0.5 - 0.5 * np.cos(2.0 * np.pi * n / WINDOW_LENGTH)          # (256,)

    # Real-DFT as a dense matrix with the window folded into the rows.
    nn = np.arange(FFT_LENGTH)
    kk = np.arange(NUM_BINS)
    ang = 2.0 * np.pi * np.outer(nn, kk) / FFT_LENGTH                    # (n_fft, n_bins)
    dft_cos = np.cos(ang) * hann[:, None]
    dft_sin = -np.sin(ang) * hann[:, None]

    # Fuse [cos | sin] along N, zero-pad bins 129 -> 256 on each half.
    cos_p = np.zeros((FFT_LENGTH, NB_PAD)); cos_p[:, :NUM_BINS] = dft_cos
    sin_p = np.zeros((FFT_LENGTH, NB_PAD)); sin_p[:, :NUM_BINS] = dft_sin
    w_fused = np.concatenate([cos_p, sin_p], axis=1)                     # (256, 512)
    w_top = w_fused[:HOP_LENGTH]                                         # (128, 512)
    w_bot = w_fused[HOP_LENGTH:]                                         # (128, 512)

    # Mel filterbank, zero-padded to (NB_PAD, NM_PAD).
    fb = _mel_filterbank(NUM_BINS)                                       # (129, 64)
    fb_p = np.zeros((NB_PAD, NM_PAD)); fb_p[:NUM_BINS, :NUM_MEL_BINS] = fb

    # bf16 kernel weights (MXU fast path); f32 reference copies.
    kernel_consts = (jnp.asarray(w_top, jnp.bfloat16),
                     jnp.asarray(w_bot, jnp.bfloat16),
                     jnp.asarray(fb_p, jnp.bfloat16))
    ref_consts = (jnp.asarray(hann[None, :], jnp.float32),
                  jnp.asarray(np.cos(ang), jnp.float32),
                  jnp.asarray(-np.sin(ang), jnp.float32),
                  jnp.asarray(fb, jnp.float32))
    return kernel_consts, ref_consts


(W_TOP, W_BOT, MEL_FB_P), (REF_WINDOW, REF_COS, REF_SIN, REF_MEL) = _build_constants()


# --------------------------------- Pallas kernel ---------------------------------
def spectrogram_kernel(a_ref, b_ref, wt_ref, wb_ref, mel_ref, out_ref):
    # a_ref/b_ref: (tb, HOP) bf16 hop rows t and t+1 -> frame t = [a_t | b_t].
    # Windowed rDFT as one fused [cos|sin] weight, split along K to match the two
    # frame halves (no in-kernel concat, no separate cos/sin matmuls).
    reim = (jnp.dot(a_ref[...], wt_ref[...], preferred_element_type=jnp.float32)
            + jnp.dot(b_ref[...], wb_ref[...], preferred_element_type=jnp.float32))  # (tb, 2*NB_PAD)
    re = reim[:, :NB_PAD]
    im = reim[:, NB_PAD:]
    mag = jnp.sqrt(re * re + im * im)                                    # f32; padded bins are exactly 0
    mel = jnp.dot(mag.astype(jnp.bfloat16), mel_ref[...],
                  preferred_element_type=jnp.float32)                    # (tb, NM_PAD)
    out_ref[...] = jnp.log(jnp.maximum(LOG_OFFSET, mel))                 # magnitude_scale='log'


def spectrogram_forward(data):
    # signal = data.flatten()
    signal = jnp.reshape(data, (-1,)).astype(jnp.float32)
    # librosa.stft(center=True) pads n_fft//2 zeros on each side.
    pad = FFT_LENGTH // 2
    padded = jnp.pad(signal, (pad, pad))
    length = padded.shape[0]
    n_frames = 1 + (length - FFT_LENGTH) // HOP_LENGTH

    # Adaptive time tile: round small inputs up only to the sublane multiple (8);
    # cap at 128 to fill the MXU M dim on longer signals.
    tb = min(MAX_TB, -(-n_frames // 8) * 8)
    t_pad = -(-n_frames // tb) * tb

    # In-kernel framing: frame t = concat(hop row t, hop row t+1); no HBM frame gather.
    n_rows = max(t_pad + 1, -(-length // HOP_LENGTH))
    padded = jnp.pad(padded, (0, n_rows * HOP_LENGTH - length))
    hops = jnp.reshape(padded, (n_rows, HOP_LENGTH)).astype(jnp.bfloat16)
    hops_a = hops[:t_pad]              # first half of each frame
    hops_b = hops[1:t_pad + 1]         # second half of each frame

    out = pl.pallas_call(
        spectrogram_kernel,
        out_shape=jax.ShapeDtypeStruct((t_pad, NM_PAD), jnp.float32),
        grid=(t_pad // tb,),
        in_specs=[
            pl.BlockSpec((tb, HOP_LENGTH), lambda i: (i, 0)),
            pl.BlockSpec((tb, HOP_LENGTH), lambda i: (i, 0)),
            pl.BlockSpec((HOP_LENGTH, 2 * NB_PAD), lambda i: (0, 0)),
            pl.BlockSpec((HOP_LENGTH, 2 * NB_PAD), lambda i: (0, 0)),
            pl.BlockSpec((NB_PAD, NM_PAD), lambda i: (0, 0)),
        ],
        out_specs=pl.BlockSpec((tb, NM_PAD), lambda i: (i, 0)),
        compiler_params=pltpu.CompilerParams(dimension_semantics=("parallel",)),
    )(hops_a, hops_b, W_TOP, W_BOT, MEL_FB_P)

    # torch: magnitude.transpose(1, 0).unsqueeze(0) -> (1, time, n_mel); drop padding.
    return out[:n_frames, :NUM_MEL_BINS][None, :, :]


# ---------------------------- pure-JAX f32 reference (check) ----------------------------
def spectrogram_reference(data):
    signal = jnp.reshape(data, (-1,)).astype(jnp.float32)
    pad = FFT_LENGTH // 2
    padded = jnp.pad(signal, (pad, pad))
    n_frames = 1 + (padded.shape[0] - FFT_LENGTH) // HOP_LENGTH
    idx = (jnp.arange(n_frames)[:, None] * HOP_LENGTH
           + jnp.arange(FFT_LENGTH)[None, :])
    frames = padded[idx] * REF_WINDOW
    hi = jax.lax.Precision.HIGHEST
    re = jnp.dot(frames, REF_COS, precision=hi)
    im = jnp.dot(frames, REF_SIN, precision=hi)
    mag = jnp.sqrt(re * re + im * im)
    mel = jnp.dot(mag, REF_MEL, precision=hi)
    return jnp.log(jnp.maximum(LOG_OFFSET, mel))[None, :, :]


if __name__ == "__main__":
    key = jax.random.PRNGKey(0)
    data = jax.random.normal(key, (2, 1024), dtype=jnp.float32)  # flattened -> 2048 samples

    out = jax.block_until_ready(spectrogram_forward(data))
    ref = jax.block_until_ready(spectrogram_reference(data))

    assert out.shape == (1, 17, NUM_MEL_BINS), out.shape
    assert out.dtype == jnp.float32
    np.testing.assert_allclose(np.asarray(out), np.asarray(ref), rtol=2e-2, atol=2e-2)

    # TODO(synk): magnitude_scale='db' needs a global max reduction (second pass) and
    # return_phase needs atan2(imag, real); neither is exercised in this 'mel'+'log' config.
    print("KERNEL_OK")
</pallas_src>

<mosaic_0001>
module attributes {stable_mosaic.version = 11 : i64} {
  func.func @spectrogram_kernel(%arg0: i32, %arg1: memref<24x128xbf16, #tpu.memory_space<vmem>>, %arg2: memref<24x128xbf16, #tpu.memory_space<vmem>>, %arg3: memref<128x512xbf16, #tpu.memory_space<vmem>>, %arg4: memref<128x512xbf16, #tpu.memory_space<vmem>>, %arg5: memref<256x128xbf16, #tpu.memory_space<vmem>>, %arg6: memref<24x128xf32, #tpu.memory_space<vmem>>) attributes {dimension_semantics = [#tpu.dimension_semantics<parallel>], iteration_bounds = array<i64: 1>, scalar_prefetch = 0 : i64, scratch_operands = 0 : i64, tpu.core_type = #tpu.core_type<tc>, window_params = [{transform_indices = @transform_0, window_bounds = array<i64: 24, 128>}, {transform_indices = @transform_1, window_bounds = array<i64: 24, 128>}, {pipeline_mode = #tpu.pipeline_mode<synchronous>, transform_indices = @transform_2, window_bounds = array<i64: 128, 512>}, {pipeline_mode = #tpu.pipeline_mode<synchronous>, transform_indices = @transform_3, window_bounds = array<i64: 128, 512>}, {pipeline_mode = #tpu.pipeline_mode<synchronous>, transform_indices = @transform_4, window_bounds = array<i64: 256, 128>}, {transform_indices = @transform_5, window_bounds = array<i64: 24, 128>}]} {
    %c0 = arith.constant 0 : index
    %c0_0 = arith.constant 0 : index
    %0 = vector.load %arg1[%c0, %c0_0] : memref<24x128xbf16, #tpu.memory_space<vmem>>, vector<24x128xbf16>
    %c0_1 = arith.constant 0 : index
    %c0_2 = arith.constant 0 : index
    %1 = vector.load %arg3[%c0_1, %c0_2] : memref<128x512xbf16, #tpu.memory_space<vmem>>, vector<128x512xbf16>
    %cst = arith.constant dense<0.000000e+00> : vector<24x512xf32>
    %2 = tpu.matmul %0, %1, %cst {dimension_numbers = #tpu.dot_dimension_numbers<[1], [0], [0], [1], [0, 0, 1, 1], [], []>} : vector<24x128xbf16>, vector<128x512xbf16>, vector<24x512xf32> -> vector<24x512xf32>
    %c0_3 = arith.constant 0 : index
    %c0_4 = arith.constant 0 : index
    %3 = vector.load %arg2[%c0_3, %c0_4] : memref<24x128xbf16, #tpu.memory_space<vmem>>, vector<24x128xbf16>
    %c0_5 = arith.constant 0 : index
    %c0_6 = arith.constant 0 : index
    %4 = vector.load %arg4[%c0_5, %c0_6] : memref<128x512xbf16, #tpu.memory_space<vmem>>, vector<128x512xbf16>
    %cst_7 = arith.constant dense<0.000000e+00> : vector<24x512xf32>
    %5 = tpu.matmul %3, %4, %cst_7 {dimension_numbers = #tpu.dot_dimension_numbers<[1], [0], [0], [1], [0, 0, 1, 1], [], []>} : vector<24x128xbf16>, vector<128x512xbf16>, vector<24x512xf32> -> vector<24x512xf32>
    %6 = arith.addf %2, %5 : vector<24x512xf32>
    %7 = vector.extract_strided_slice %6 {offsets = [0, 0], sizes = [24, 256], strides = [1, 1]} : vector<24x512xf32> to vector<24x256xf32>
    %8 = vector.extract_strided_slice %6 {offsets = [0, 256], sizes = [24, 256], strides = [1, 1]} : vector<24x512xf32> to vector<24x256xf32>
    %9 = arith.mulf %7, %7 : vector<24x256xf32>
    %10 = arith.mulf %8, %8 : vector<24x256xf32>
    %11 = arith.addf %9, %10 : vector<24x256xf32>
    %12 = math.sqrt %11 : vector<24x256xf32>
    %13 = arith.truncf %12 : vector<24x256xf32> to vector<24x256xbf16>
    %c0_8 = arith.constant 0 : index
    %c0_9 = arith.constant 0 : index
    %14 = vector.load %arg5[%c0_8, %c0_9] : memref<256x128xbf16, #tpu.memory_space<vmem>>, vector<256x128xbf16>
    %cst_10 = arith.constant dense<0.000000e+00> : vector<24x128xf32>
    %15 = tpu.matmul %13, %14, %cst_10 {dimension_numbers = #tpu.dot_dimension_numbers<[1], [0], [0], [1], [0, 0, 1, 1], [], []>} : vector<24x256xbf16>, vector<256x128xbf16>, vector<24x128xf32> -> vector<24x128xf32>
    %cst_11 = arith.constant 1.000000e-03 : f32
    %16 = vector.broadcast %cst_11 : f32 to vector<24x128xf32>
    %17 = arith.maximumf %16, %15 : vector<24x128xf32>
    %18 = math.log %17 : vector<24x128xf32>
    %c0_12 = arith.constant 0 : index
    %c0_13 = arith.constant 0 : index
    %19 = vector.load %arg6[%c0_12, %c0_13] : memref<24x128xf32, #tpu.memory_space<vmem>>, vector<24x128xf32>
    tpu.vector_store %arg6[%c0_12, %c0_13], %18 {strides = array<i32>} : memref<24x128xf32, #tpu.memory_space<vmem>>, vector<24x128xf32>,
    return
  }
  func.func @transform_0(%arg0: i32) -> (i32, i32) {
    %c0_i32 = arith.constant 0 : i32
    %c0_i32_0 = arith.constant 0 : i32
    return %arg0, %c0_i32 : i32, i32
  }
  func.func @transform_1(%arg0: i32) -> (i32, i32) {
    %c0_i32 = arith.constant 0 : i32
    %c0_i32_0 = arith.constant 0 : i32
    return %arg0, %c0_i32 : i32, i32
  }
  func.func @transform_2(%arg0: i32) -> (i32, i32) {
    %c0_i32 = arith.constant 0 : i32
    %c0_i32_0 = arith.constant 0 : i32
    %c0_i32_1 = arith.constant 0 : i32
    return %c0_i32, %c0_i32_0 : i32, i32
  }
  func.func @transform_3(%arg0: i32) -> (i32, i32) {
    %c0_i32 = arith.constant 0 : i32
    %c0_i32_0 = arith.constant 0 : i32
    %c0_i32_1 = arith.constant 0 : i32
    return %c0_i32, %c0_i32_0 : i32, i32
  }
  func.func @transform_4(%arg0: i32) -> (i32, i32) {
    %c0_i32 = arith.constant 0 : i32
    %c0_i32_0 = arith.constant 0 : i32
    %c0_i32_1 = arith.constant 0 : i32
    return %c0_i32, %c0_i32_0 : i32, i32
  }
  func.func @transform_5(%arg0: i32) -> (i32, i32) {
    %c0_i32 = arith.constant 0 : i32
    %c0_i32_0 = arith.constant 0 : i32
    return %arg0, %c0_i32 : i32, i32
  }
}

</mosaic_0001>

<bundles_post_ra>
// kernel: tpu_custom_call.1
= control target key start
LH: loop header
LB: loop body
LE: loop exit
PB: predicated region body
PF: predicated region fallthrough
CT: control target
= control target key end

     0   :  { %10 = vsyncpa [#allocation3], 0  ;;  %s1479_s0 = inlined_call_operand.hbm [shape: bf16[24,128], index: 0, kind: input, shape index: {}]   ;;  %s1480_s1 = inlined_call_operand.hbm [shape: bf16[24,128], index: 1, kind: input, shape index: {}]   ;;  %s1481_s2 = inlined_call_operand.hbm [shape: bf16[128,512], index: 2, kind: input, shape index: {}]   ;;  %s1482_s3 = inlined_call_operand.hbm [shape: bf16[128,512], index: 3, kind: input, shape index: {}]   ;;  %s1483_s4 = inlined_call_operand.hbm [shape: bf16[256,128], index: 4, kind: input, shape index: {}]   ;;  %s1484_s5 = inlined_call_operand.hbm [shape: f32[24,128], index: 5, kind: output, shape index: {}]  }
   0x1   :  { %11 = vsyncpa [#allocation6], 0 }
   0x2   :  { %12 = vsyncpa [#allocation9], 0 }
   0x3   :  { %13 = vsyncpa [#allocation4], 0  ;;  %s1378_s18 = smov [#allocation5]  }
   0x4   :  { %s31_s19 = sshll.u32 %s1378_s18, 4  ;;  %s32_s19 = int_to_ptr.vmem [resolvable:$true] %s31_s19 }
   0x5   :  { %s1258_s20 = scalar_lea.vmem %s32_s19, 192  ;;  %p1263_p1 = scmp.lt.s32.totalorder %s32_s19, %s32_s19 }
   0x6   :  { %p1259_p0 = scmp.ne.s32.totalorder %s32_s19, %s1258_s20  ;;  %p1264_p2 = scmp.lt.s32.totalorder %s1258_s20, %s1258_s20 }
   0x8   :  { %p1265_p3 = por %p1264_p2, %p1263_p1 }
   0xa   :  { %p1266_p4 = pnand %p1265_p3, %p1259_p0 }
   0xc   :  { %1269 = shalt.err (!%p1266_p4)
}
   0xd   :  { %s1379_s21 = smov 64   ;;  %s1380_s22 = smov 4  }
   0xe   :  { %37 = dma.hbm_to_vmem [thread:$0]  %s1480_s1, 192, %s32_s19, [#allocation6], %s1379_s21, %s1379_s21, %s1380_s22  }
   0xf   :  { %s1381_s25 = smov [#allocation8]   ;;  %s1382_s27 = smov [#allocation2]  }
  0x10   :  { %s55_s26 = sshll.u32 %s1381_s25, 4  ;;  %s19_s28 = sshll.u32 %s1382_s27, 4  ;;  %s56_s26 = int_to_ptr.vmem [resolvable:$true] %s55_s26  ;;  %s20_s28 = int_to_ptr.vmem [resolvable:$true] %s19_s28 }
  0x11   :  { %s1278_s29 = scalar_lea.vmem %s56_s26, 4096  ;;  %p1283_p6 = scmp.lt.s32.totalorder %s56_s26, %s56_s26 }
  0x12   :  { %p1279_p5 = scmp.ne.s32.totalorder %s56_s26, %s1278_s29  ;;  %p1284_p7 = scmp.lt.s32.totalorder %s1278_s29, %s1278_s29 }
  0x14   :  { %p1285_p8 = por %p1284_p7, %p1283_p6 }
  0x16   :  { %p1286_p9 = pnand %p1285_p8, %p1279_p5 }
  0x18   :  { %1289 = shalt.err (!%p1286_p9)
}
  0x19   :  { %s1383_s30 = smov 256   ;;  %s1384_s6 = smov 16  }
  0x1a   :  { %61 = dma.hbm_to_vmem [thread:$0]  %s1482_s3, 4096, %s56_s26, [#allocation9], %s1383_s30, %s1383_s30, %s1384_s6  }
  0x1b   :  { %s1298_s1 = scalar_lea.vmem %s20_s28, 192  ;;  %p1303_p11 = scmp.lt.s32.totalorder %s20_s28, %s20_s28 }
  0x1c   :  { %p1299_p10 = scmp.ne.s32.totalorder %s20_s28, %s1298_s1  ;;  %p1304_p12 = scmp.lt.s32.totalorder %s1298_s1, %s1298_s1 }
  0x1e   :  { %p1305_p13 = por %p1304_p12, %p1303_p11 }
  0x20   :  { %p1306_p0 = pnand %p1305_p13, %p1299_p10 }
  0x22   :  { %1309 = shalt.err (!%p1306_p0)
}
  0x23   :  { %25 = dma.hbm_to_vmem [thread:$0]  %s1479_s0, 192, %s20_s28, [#allocation3], %s1379_s21, %s1379_s21, %s1380_s22  }
  0x24   :  { %s1385_s11 = smov [#allocation7]   ;;  %s1386_s13 = smov [#allocation10]  }
  0x25   :  { %s43_s12 = sshll.u32 %s1385_s11, 4  ;;  %s67_s3 = sshll.u32 %s1386_s13, 4  ;;  %s44_s12 = int_to_ptr.vmem [resolvable:$true] %s43_s12  ;;  %s68_s3 = int_to_ptr.vmem [resolvable:$true] %s67_s3 }
  0x26   :  { %s1318_s14 = scalar_lea.vmem %s44_s12, 4096  ;;  %p1323_p2 = scmp.lt.s32.totalorder %s44_s12, %s44_s12 }
  0x27   :  { %p1319_p1 = scmp.ne.s32.totalorder %s44_s12, %s1318_s14  ;;  %p1324_p3 = scmp.lt.s32.totalorder %s1318_s14, %s1318_s14 }
  0x29   :  { %p1325_p4 = por %p1324_p3, %p1323_p2 }
  0x2b   :  { %p1326_p5 = pnand %p1325_p4, %p1319_p1 }
  0x2d   :  { %1329 = shalt.err (!%p1326_p5)
}
  0x2e   :  { %49 = dma.hbm_to_vmem [thread:$0]  %s1481_s2, 4096, %s44_s12, [#allocation6], %s1383_s30, %s1383_s30, %s1384_s6  }
  0x2f   :  { %s1338_s17 = scalar_lea.vmem %s68_s3, 2048  ;;  %p1343_p7 = scmp.lt.s32.totalorder %s68_s3, %s68_s3 }
  0x30   :  { %p1339_p6 = scmp.ne.s32.totalorder %s68_s3, %s1338_s17  ;;  %p1344_p8 = scmp.lt.s32.totalorder %s1338_s17, %s1338_s17 }
  0x32   :  { %p1345_p9 = por %p1344_p8, %p1343_p7 }
  0x34   :  { %p1346_p10 = pnand %p1345_p9, %p1339_p6 }
  0x36   :  { %1349 = shalt.err (!%p1346_p10)
}
  0x37   :  { %73 = dma.hbm_to_vmem [thread:$0]  %s1483_s4, 2048, %s68_s3, [#allocation9], %s1379_s21, %s1379_s21, %s1380_s22  }
  0x38   :  { %1370 = dma.done.wait [#allocation3], 192  }
  0x39   :  { %1371 = vsyncadd [#allocation3], 4294967104 }
  0x3a   :  { %1372 = dma.done.wait [#allocation6], 4288  }
  0x3b   :  { %1373 = vsyncadd [#allocation6], 4294963008 }
  0x3c   :  { %1374 = dma.done.wait [#allocation9], 6144  }
  0x3d   :  { %1375 = vsyncadd [#allocation9], 4294961152  ;;  %v1387_v0 = vmov 0   ;;  %v1116_v1 = vld [vmem:[#allocation8 + $0xe4] ss:$16 sps:$4 sm:$0xff]   ;;  %s1388_s2 = smov [#allocation11]  }
  0x3e   :  { %362 = vmatprep.mubr.bf16.mxu0 %v1387_v0  ;;  %413 = vmatprep.mubr.bf16.mxu1 %v1387_v0  ;;  %v1118_v2 = vld [vmem:[#allocation8 + $0xec] ss:$16 sps:$4 sm:$0xff]   ;;  %v1120_v3 = vld [vmem:[#allocation8 + $0xe0] ss:$16 sps:$4 sm:$0xff]   ;;  %v1121_v4 = vld [vmem:[#allocation8 + $0xe8] ss:$16 sps:$4 sm:$0xff]  }
  0x3f   :  { %330 = vmatprep.subr.bf16.mxu0 %v1116_v1  ;;  %381 = vmatprep.subr.bf16.mxu1 %v1118_v2  ;;  %v1122_v5 = vld [vmem:[#allocation8 + $0xc4] ss:$16 sps:$4 sm:$0xff]   ;;  %v1124_v6 = vld [vmem:[#allocation8 + $0xcc] ss:$16 sps:$4 sm:$0xff]   ;;  %v1126_v7 = vld [vmem:[#allocation8 + $0xc0] ss:$16 sps:$4 sm:$0xff]  }
  0x40   :  { %331 = vmatpush1.bf16.msra.mxu0 %v1120_v3  ;;  %382 = vmatpush1.bf16.msra.mxu1 %v1121_v4  ;;  %v1127_v8 = vld [vmem:[#allocation8 + $0xc8] ss:$16 sps:$4 sm:$0xff]   ;;  %v1128_v9 = vld [vmem:[#allocation8 + $0xa4] ss:$16 sps:$4 sm:$0xff]   ;;  %v1130_v10 = vld [vmem:[#allocation8 + $0xac] ss:$16 sps:$4 sm:$0xff]  }
  0x41   :  { %332 = vmatprep.subr.bf16.mxu0 %v1122_v5  ;;  %383 = vmatprep.subr.bf16.mxu1 %v1124_v6  ;;  %v1132_v11 = vld [vmem:[#allocation8 + $0xa0] ss:$16 sps:$4 sm:$0xff]   ;;  %v1133_v12 = vld [vmem:[#allocation8 + $0xa8] ss:$16 sps:$4 sm:$0xff]   ;;  %v1134_v13 = vld [vmem:[#allocation8 + $0x84] ss:$16 sps:$4 sm:$0xff]  }
  0x42   :  { %v1136_v14 = vld [vmem:[#allocation8 + $0x8c] ss:$16 sps:$4 sm:$0xff]   ;;  %v1138_v15 = vld [vmem:[#allocation8 + $0x80] ss:$16 sps:$4 sm:$0xff]   ;;  %v1139_v16 = vld [vmem:[#allocation8 + $0x88] ss:$16 sps:$4 sm:$0xff]  }
  0x43   :  { %v1140_v17 = vld [vmem:[#allocation8 + $0x64] ss:$16 sps:$4 sm:$0xff]   ;;  %v1142_v18 = vld [vmem:[#allocation8 + $0x6c] ss:$16 sps:$4 sm:$0xff]   ;;  %v1144_v19 = vld [vmem:[#allocation8 + $0x60] ss:$16 sps:$4 sm:$0xff]  }
  0x44   :  { %333 = vmatpush1.bf16.msra.mxu0 %v1126_v7  ;;  %384 = vmatpush1.bf16.msra.mxu1 %v1127_v8  ;;  %v1145_v20 = vld [vmem:[#allocation8 + $0x68] ss:$16 sps:$4 sm:$0xff]   ;;  %v1146_v21 = vld [vmem:[#allocation8 + $0x44] ss:$16 sps:$4 sm:$0xff]   ;;  %v1148_v22 = vld [vmem:[#allocation8 + $0x4c] ss:$16 sps:$4 sm:$0xff]  }
  0x45   :  { %334 = vmatprep.subr.bf16.mxu0 %v1128_v9  ;;  %385 = vmatprep.subr.bf16.mxu1 %v1130_v10  ;;  %v1150_v23 = vld [vmem:[#allocation8 + $0x40] ss:$16 sps:$4 sm:$0xff]   ;;  %v1151_v24 = vld [vmem:[#allocation8 + $0x48] ss:$16 sps:$4 sm:$0xff]   ;;  %v1152_v25 = vld [vmem:[#allocation8 + $0x24] ss:$16 sps:$4 sm:$0xff]  }
  0x46   :  { %v1154_v26 = vld [vmem:[#allocation8 + $0x2c] ss:$16 sps:$4 sm:$0xff]   ;;  %v1156_v27 = vld [vmem:[#allocation8 + $0x20] ss:$16 sps:$4 sm:$0xff]   ;;  %v1157_v28 = vld [vmem:[#allocation8 + $0x28] ss:$16 sps:$4 sm:$0xff]  }
  0x47   :  { %v1158_v29 = vld [vmem:[#allocation8 + $0x4] ss:$16 sps:$4 sm:$0xff]   ;;  %v1160_v30 = vld [vmem:[#allocation8 + $0xc] ss:$16 sps:$4 sm:$0xff]   ;;  %v1162_v31 = vld [vmem:[#allocation8] ss:$16 sps:$4 sm:$0xff]  }
  0x48   :  { %335 = vmatpush1.bf16.msra.mxu0 %v1132_v11  ;;  %386 = vmatpush1.bf16.msra.mxu1 %v1133_v12  ;;  %v1163_v32 = vld [vmem:[#allocation8 + $0x8] ss:$16 sps:$4 sm:$0xff]   ;;  %v1167_v33 = vld [vmem:[#allocation7 + $0xe4] ss:$16 sps:$4 sm:$0xff]   ;;  %v1170_v34 = vld [vmem:[#allocation7 + $0xec] ss:$16 sps:$4 sm:$0xff]  }
  0x49   :  { %336 = vmatprep.subr.bf16.mxu0 %v1134_v13  ;;  %387 = vmatprep.subr.bf16.mxu1 %v1136_v14  ;;  %v1164_v35 = vld [vmem:[#allocation5] sm:$0xff]   ;;  %v1165_v36 = vld [vmem:[#allocation7 + $0xe0] ss:$16 sps:$4 sm:$0xff]   ;;  %v1176_v39 = vld [vmem:[#allocation7 + $0xcc] ss:$16 sps:$4 sm:$0xff]   ;;  %s961_s4 = sshll.u32 %s1388_s2, 4  ;;  %s962_s4 = int_to_ptr.vmem [resolvable:$true] %s961_s4 }
  0x4a   :  { %v1168_v37 = vld [vmem:[#allocation7 + $0xe8] ss:$16 sps:$4 sm:$0xff]   ;;  %v1173_v38 = vld [vmem:[#allocation7 + $0xc4] ss:$16 sps:$4 sm:$0xff]   ;;  %v1171_v40 = vld [vmem:[#allocation7 + $0xc0] ss:$16 sps:$4 sm:$0xff]   ;;  %p1355_p12 = scmp.lt.s32.totalorder %s962_s4, %s962_s4 }
  0x4b   :  { %v1174_v41 = vld [vmem:[#allocation7 + $0xc8] ss:$16 sps:$4 sm:$0xff]   ;;  %v1179_v42 = vld [vmem:[#allocation7 + $0xa4] ss:$16 sps:$4 sm:$0xff]   ;;  %v1182_v43 = vld [vmem:[#allocation7 + $0xac] ss:$16 sps:$4 sm:$0xff]  }
  0x4c   :  { %337 = vmatpush1.bf16.msra.mxu0 %v1138_v15  ;;  %388 = vmatpush1.bf16.msra.mxu1 %v1139_v16  ;;  %v1177_v44 = vld [vmem:[#allocation7 + $0xa0] ss:$16 sps:$4 sm:$0xff]   ;;  %v1195_v45 = vld [vmem:[#allocation5 + $0x8] ss:$0 sps:$4 sm:$0xff]   ;;  %v1180_v46 = vld [vmem:[#allocation7 + $0xa8] ss:$16 sps:$4 sm:$0xff]  }
  0x4d   :  { %338 = vmatprep.subr.bf16.mxu0 %v1140_v17  ;;  %389 = vmatprep.subr.bf16.mxu1 %v1142_v18  ;;  %v1185_v47 = vld [vmem:[#allocation7 + $0x84] ss:$16 sps:$4 sm:$0xff]   ;;  %v1188_v48 = vld [vmem:[#allocation7 + $0x8c] ss:$16 sps:$4 sm:$0xff]   ;;  %v1183_v49 = vld [vmem:[#allocation7 + $0x80] ss:$16 sps:$4 sm:$0xff]  }
  0x4e   :  { %v1186_v50 = vld [vmem:[#allocation7 + $0x88] ss:$16 sps:$4 sm:$0xff]   ;;  %v1191_v51 = vld [vmem:[#allocation7 + $0x64] ss:$16 sps:$4 sm:$0xff]   ;;  %v1194_v52 = vld [vmem:[#allocation7 + $0x6c] ss:$16 sps:$4 sm:$0xff]  }
  0x4f   :  { %v1189_v53 = vld [vmem:[#allocation7 + $0x60] ss:$16 sps:$4 sm:$0xff]   ;;  %v1192_v54 = vld [vmem:[#allocation7 + $0x68] ss:$16 sps:$4 sm:$0xff]   ;;  %v1198_v55 = vld [vmem:[#allocation7 + $0x44] ss:$16 sps:$4 sm:$0xff]  }
  0x50   :  { %339 = vmatpush1.bf16.msra.mxu0 %v1144_v19  ;;  %390 = vmatpush1.bf16.msra.mxu1 %v1145_v20  ;;  %v1201_v56 = vld [vmem:[#allocation7 + $0x4c] ss:$16 sps:$4 sm:$0xff]   ;;  %v1196_v57 = vld [vmem:[#allocation7 + $0x40] ss:$16 sps:$4 sm:$0xff]   ;;  %v1199_v58 = vld [vmem:[#allocation7 + $0x48] ss:$16 sps:$4 sm:$0xff]  }
  0x51   :  { %340 = vmatprep.subr.bf16.mxu0 %v1146_v21  ;;  %391 = vmatprep.subr.bf16.mxu1 %v1148_v22  ;;  %v1204_v59 = vld [vmem:[#allocation7 + $0x24] ss:$16 sps:$4 sm:$0xff]   ;;  %v1207_v60 = vld [vmem:[#allocation7 + $0x2c] ss:$16 sps:$4 sm:$0xff]   ;;  %v1202_v61 = vld [vmem:[#allocation7 + $0x20] ss:$16 sps:$4 sm:$0xff]  }
  0x52   :  { %v1205_v62 = vld [vmem:[#allocation7 + $0x28] ss:$16 sps:$4 sm:$0xff]   ;;  %v1210_v63 = vld [vmem:[#allocation7 + $0x4] ss:$16 sps:$4 sm:$0xff]   ;;  %v1213_v1 = vld [vmem:[#allocation7 + $0xc] ss:$16 sps:$4 sm:$0xff]  }
  0x53   :  { %v1208_v2 = vld [vmem:[#allocation7] ss:$16 sps:$4 sm:$0xff]   ;;  %v1211_v3 = vld [vmem:[#allocation7 + $0x8] ss:$16 sps:$4 sm:$0xff]   ;;  %s1350_s19 = scalar_lea.vmem %s962_s4, 384 }
  0x54   :  { %341 = vmatpush1.bf16.msra.mxu0 %v1150_v23  ;;  %392 = vmatpush1.bf16.msra.mxu1 %v1151_v24  ;;  %v1214_v4 = vld [vmem:[#allocation2] sm:$0xff]   ;;  %v1215_v5 = vld [vmem:[#allocation2 + $0x8] ss:$0 sps:$4 sm:$0xff]   ;;  %v1216_v6 = vld [vmem:[#allocation10 + $0x78] sm:$0xff]   ;;  %p1351_p11 = scmp.ne.s32.totalorder %s962_s4, %s1350_s19  ;;  %p1356_p13 = scmp.lt.s32.totalorder %s1350_s19, %s1350_s19 }
  0x55   :  { %342 = vmatprep.subr.bf16.mxu0 %v1152_v25  ;;  %393 = vmatprep.subr.bf16.mxu1 %v1154_v26  ;;  %v1217_v7 = vld [vmem:[#allocation10 + $0x38] sm:$0xff]   ;;  %v1218_v8 = vld [vmem:[#allocation10 + $0x70] sm:$0xff]   ;;  %v1220_v10 = vld [vmem:[#allocation10 + $0x68] sm:$0xff]  }
  0x56   :  { %v1219_v9 = vld [vmem:[#allocation10 + $0x30] sm:$0xff]   ;;  %v1221_v11 = vld [vmem:[#allocation10 + $0x28] sm:$0xff]   ;;  %v1223_v12 = vld [vmem:[#allocation10 + $0x20] sm:$0xff]   ;;  %p1357_p0 = por %p1356_p13, %p1355_p12 }
  0x57   :  { %v1224_v13 = vld [vmem:[#allocation10 + $0x58] sm:$0xff]   ;;  %v1226_v15 = vld [vmem:[#allocation10 + $0x50] sm:$0xff]   ;;  %v1228_v17 = vld [vmem:[#allocation10 + $0x48] sm:$0xff]  }
  0x58   :  { %343 = vmatpush1.bf16.msra.mxu0 %v1156_v27  ;;  %394 = vmatpush1.bf16.msra.mxu1 %v1157_v28  ;;  %v1225_v14 = vld [vmem:[#allocation10 + $0x18] sm:$0xff]   ;;  %v1227_v16 = vld [vmem:[#allocation10 + $0x10] sm:$0xff]   ;;  %v1229_v18 = vld [vmem:[#allocation10 + $0x8] sm:$0xff]   ;;  %p1358_p1 = pnand %p1357_p0, %p1351_p11 }
  0x59   :  { %344 = vmatprep.subr.bf16.mxu0 %v1158_v29  ;;  %395 = vmatprep.subr.bf16.mxu1 %v1160_v30  ;;  %v1230_v19 = vld [vmem:[#allocation10 + $0x40] sm:$0xff]  }
  0x5a   :  { %v1231_v20 = vld [vmem:[#allocation10] sm:$0xff]  }
  0x5c   :  { %345 = vmatpush1.bf16.msra.mxu0 %v1162_v31  ;;  %396 = vmatpush1.bf16.msra.mxu1 %v1163_v32 }
  0x5d   :  { %602 = vmatprep.subr.bf16.mxu0 %v1167_v33  ;;  %653 = vmatprep.subr.bf16.mxu1 %v1170_v34 }
  0x5f   :  { %363 = vmatmul.mubr.bf16.vlgmr.msra.gmra.mxu0 %v1164_v35  ;;  %414 = vmatmul.mubr.bf16.vlgmr.msra.gmra.mxu1 %v1164_v35 }
  0x60   :  { %603 = vmatpush1.bf16.msra.mxu0 %v1165_v36  ;;  %654 = vmatpush1.bf16.msra.mxu1 %v1168_v37 }
  0x61   :  { %604 = vmatprep.subr.bf16.mxu0 %v1173_v38  ;;  %655 = vmatprep.subr.bf16.mxu1 %v1176_v39 }
  0x62   :  { %372 = vmatprep.mubr.bf16.mxu0 %v1387_v0  ;;  %423 = vmatprep.mubr.bf16.mxu1 %v1387_v0 }
  0x64   :  { %605 = vmatpush1.bf16.msra.mxu0 %v1171_v40  ;;  %656 = vmatpush1.bf16.msra.mxu1 %v1174_v41 }
  0x65   :  { %606 = vmatprep.subr.bf16.mxu0 %v1179_v42  ;;  %657 = vmatprep.subr.bf16.mxu1 %v1182_v43 }
  0x67   :  { %373 = vmatmul.mubr.bf16.gmra.mxu0 %v1195_v45  ;;  %424 = vmatmul.mubr.bf16.gmra.mxu1 %v1195_v45 }
  0x68   :  { %607 = vmatpush1.bf16.msra.mxu0 %v1177_v44  ;;  %658 = vmatpush1.bf16.msra.mxu1 %v1180_v46 }
  0x69   :  { %608 = vmatprep.subr.bf16.mxu0 %v1185_v47  ;;  %659 = vmatprep.subr.bf16.mxu1 %v1188_v48 }
  0x6a   :  { %634 = vmatprep.mubr.bf16.mxu0 %v1387_v0  ;;  %685 = vmatprep.mubr.bf16.mxu1 %v1387_v0 }
  0x6c   :  { %609 = vmatpush1.bf16.msra.mxu0 %v1183_v49  ;;  %660 = vmatpush1.bf16.msra.mxu1 %v1186_v50 }
  0x6d   :  { %610 = vmatprep.subr.bf16.mxu0 %v1191_v51  ;;  %661 = vmatprep.subr.bf16.mxu1 %v1194_v52 }
  0x70   :  { %611 = vmatpush1.bf16.msra.mxu0 %v1189_v53  ;;  %662 = vmatpush1.bf16.msra.mxu1 %v1192_v54 }
  0x71   :  { %612 = vmatprep.subr.bf16.mxu0 %v1198_v55  ;;  %663 = vmatprep.subr.bf16.mxu1 %v1201_v56 }
  0x74   :  { %613 = vmatpush1.bf16.msra.mxu0 %v1196_v57  ;;  %664 = vmatpush1.bf16.msra.mxu1 %v1199_v58 }
  0x75   :  { %614 = vmatprep.subr.bf16.mxu0 %v1204_v59  ;;  %665 = vmatprep.subr.bf16.mxu1 %v1207_v60 }
  0x78   :  { %615 = vmatpush1.bf16.msra.mxu0 %v1202_v61  ;;  %666 = vmatpush1.bf16.msra.mxu1 %v1205_v62 }
  0x79   :  { %616 = vmatprep.subr.bf16.mxu0 %v1210_v63  ;;  %667 = vmatprep.subr.bf16.mxu1 %v1213_v1 }
  0x7c   :  { %617 = vmatpush1.bf16.msra.mxu0 %v1208_v2  ;;  %668 = vmatpush1.bf16.msra.mxu1 %v1211_v3 }
  0x7d   :  { %1059 = vmatprep.subr.bf16.mxu0 %v1216_v6  ;;  %1087 = vmatprep.subr.bf16.mxu1 %v1216_v6 }
  0x7f   :  { %635 = vmatmul.mubr.bf16.vlgmr.msra.gmra.mxu0 %v1214_v4  ;;  %686 = vmatmul.mubr.bf16.vlgmr.msra.gmra.mxu1 %v1214_v4 }
  0x80   :  { %644 = vmatprep.mubr.bf16.mxu0 %v1387_v0  ;;  %695 = vmatprep.mubr.bf16.mxu1 %v1387_v0  ;;  %v1222_v0 = vld [vmem:[#allocation10 + $0x60] sm:$0xff]  }
  0x81   :  { %1060 = vmatpush3.bf16.msra.mxu0 %v1217_v7  ;;  %1095 = vmatpush3.bf16.msra.mxu1 %v1217_v7 }
  0x82   :  { %1061 = vmatprep.subr.bf16.mxu0 %v1218_v8  ;;  %1088 = vmatprep.subr.bf16.mxu1 %v1218_v8 }
  0x85   :  { %1062 = vmatpush3.bf16.msra.mxu0 %v1219_v9  ;;  %1096 = vmatpush3.bf16.msra.mxu1 %v1219_v9 }
  0x86   :  { %1063 = vmatprep.subr.bf16.mxu0 %v1220_v10  ;;  %1089 = vmatprep.subr.bf16.mxu1 %v1220_v10 }
  0x87   :  { %645 = vmatmul.mubr.bf16.gmra.mxu0 %v1215_v5  ;;  %696 = vmatmul.mubr.bf16.gmra.mxu1 %v1215_v5 }
  0x89   :  { %1064 = vmatpush3.bf16.msra.mxu0 %v1221_v11  ;;  %1097 = vmatpush3.bf16.msra.mxu1 %v1221_v11 }
  0x8a   :  { %1065 = vmatprep.subr.bf16.mxu0 %v1222_v0  ;;  %1090 = vmatprep.subr.bf16.mxu1 %v1222_v0 }
  0x8d   :  { %1066 = vmatpush3.bf16.msra.mxu0 %v1223_v12  ;;  %1098 = vmatpush3.bf16.msra.mxu1 %v1223_v12 }
  0x8e   :  { %1067 = vmatprep.subr.bf16.mxu0 %v1224_v13  ;;  %1091 = vmatprep.subr.bf16.mxu1 %v1224_v13 }
  0x91   :  { %1068 = vmatpush3.bf16.msra.mxu0 %v1225_v14  ;;  %1099 = vmatpush3.bf16.msra.mxu1 %v1225_v14 }
  0x92   :  { %1069 = vmatprep.subr.bf16.mxu0 %v1226_v15  ;;  %1092 = vmatprep.subr.bf16.mxu1 %v1226_v15 }
  0x95   :  { %1070 = vmatpush3.bf16.msra.mxu0 %v1227_v16  ;;  %1100 = vmatpush3.bf16.msra.mxu1 %v1227_v16 }
  0x96   :  { %1071 = vmatprep.subr.bf16.mxu0 %v1228_v17  ;;  %1093 = vmatprep.subr.bf16.mxu1 %v1228_v17 }
  0x99   :  { %1072 = vmatpush3.bf16.msra.mxu0 %v1229_v18  ;;  %1101 = vmatpush3.bf16.msra.mxu1 %v1229_v18 }
  0x9a   :  { %1073 = vmatprep.subr.bf16.mxu0 %v1230_v19  ;;  %1094 = vmatprep.subr.bf16.mxu1 %v1230_v19 }
  0x9d   :  { %1074 = vmatpush3.bf16.msra.mxu0 %v1231_v20  ;;  %1102 = vmatpush3.bf16.msra.mxu1 %v1231_v20 }
 0x11f   :  { %v364_v21 = vpop.f32.mrf.mxu0  ;;  %v415_v22 = vpop.f32.mrf.mxu1 }
 0x121   :  { %v366_v23 = vpop.f32.mrf.mxu0  ;;  %v417_v24 = vpop.f32.mrf.mxu1 }
 0x123   :  { %v368_v25 = vpop.f32.mrf.mxu0  ;;  %v419_v26 = vpop.f32.mrf.mxu1 }
 0x125   :  { %v370_v27 = vpop.f32.mrf.mxu0  ;;  %v421_v28 = vpop.f32.mrf.mxu1 }
 0x127   :  { %v374_v29 = vpop.f32.mrf.mxu0  ;;  %v425_v30 = vpop.f32.mrf.mxu1 }
 0x129   :  { %v376_v31 = vpop.f32.mrf.mxu0  ;;  %v427_v32 = vpop.f32.mrf.mxu1 }
 0x12b   :  { %v378_v33 = vpop.f32.mrf.mxu0  ;;  %v429_v34 = vpop.f32.mrf.mxu1 }
 0x12d   :  { %v379_v35 = vpop.f32.mrf.mxu0  ;;  %v430_v36 = vpop.f32.mrf.mxu1 }
 0x13f   :  { %v636_v37 = vpop.f32.mrf.mxu0  ;;  %v687_v38 = vpop.f32.mrf.mxu1 }
 0x140   :  { %v637_v39 = vadd.f32 %v636_v37, %v364_v21  ;;  %v688_v40 = vadd.f32 %v687_v38, %v415_v22 }
 0x141   :  { %v638_v41 = vpop.f32.mrf.mxu0  ;;  %v689_v42 = vpop.f32.mrf.mxu1 }
 0x142   :  { %v704_v43 = vmul.f32 %v637_v39, %v637_v39  ;;  %v710_v44 = vmul.f32 %v688_v40, %v688_v40  ;;  %v639_v45 = vadd.f32 %v638_v41, %v366_v23  ;;  %v690_v46 = vadd.f32 %v689_v42, %v417_v24 }
 0x143   :  { %v640_v47 = vpop.f32.mrf.mxu0  ;;  %v691_v48 = vpop.f32.mrf.mxu1 }
 0x144   :  { %v1453_v49 = vadd.f32 %v710_v44, %v704_v43  ;;  %v705_v50 = vmul.f32 %v639_v45, %v639_v45  ;;  %v711_v51 = vmul.f32 %v690_v46, %v690_v46  ;;  %v641_v52 = vadd.f32 %v640_v47, %v368_v25 }
 0x145   :  { %v692_v53 = vadd.f32 %v691_v48, %v419_v26  ;;  %v642_v54 = vpop.f32.mrf.mxu0  ;;  %v693_v55 = vpop.f32.mrf.mxu1 }
 0x146   :  { %v1455_v56 = vadd.f32 %v711_v51, %v705_v50  ;;  %v706_v57 = vmul.f32 %v641_v52, %v641_v52  ;;  %v643_v58 = vadd.f32 %v642_v54, %v370_v27  ;;  %1232 = vrsqrt.f32 %v1453_v49 }
 0x147   :  { %v712_v59 = vmul.f32 %v692_v53, %v692_v53  ;;  %v694_v60 = vadd.f32 %v693_v55, %v421_v28  ;;  %v646_v61 = vpop.f32.mrf.mxu0  ;;  %v697_v62 = vpop.f32.mrf.mxu1  ;;  %vm724_vm1 = vcmp.eq.f32.partialorder %v1453_v49, inf  ;;  %vm726_vm2 = vcmp.eq.f32.partialorder %v1453_v49, 0.0 }
 0x148   :  { %1234 = vrsqrt.f32 %v1455_v56  ;;  %v707_v63 = vmul.f32 %v643_v58, %v643_v58  ;;  %v647_v1 = vadd.f32 %v646_v61, %v374_v29  ;;  %v698_v2 = vadd.f32 %v697_v62, %v425_v30 }
 0x149   :  { %v718_v3 = vadd.f32 %v712_v59, %v706_v57  ;;  %v713_v4 = vmul.f32 %v694_v60, %v694_v60  ;;  %v648_v5 = vpop.f32.mrf.mxu0  ;;  %v699_v6 = vpop.f32.mrf.mxu1  ;;  %vm731_vm0 = vcmp.eq.f32.partialorder %v1455_v56, inf  ;;  %vm733_vm3 = vcmp.eq.f32.partialorder %v1455_v56, 0.0 }
 0x14a   :  { %v708_v7 = vmul.f32 %v647_v1, %v647_v1  ;;  %v714_v8 = vmul.f32 %v698_v2, %v698_v2  ;;  %v649_v9 = vadd.f32 %v648_v5, %v376_v31  ;;  %v700_v10 = vadd.f32 %v699_v6, %v427_v32 }
 0x14b   :  { %1236 = vrsqrt.f32 %v718_v3  ;;  %v719_v11 = vadd.f32 %v713_v4, %v707_v63  ;;  %v650_v0 = vpop.f32.mrf.mxu0  ;;  %v701_v12 = vpop.f32.mrf.mxu1  ;;  %v734_v24 = vand.u32 2147483648, %v1455_v56  ;;  %v727_v25 = vand.u32 2147483648, %v1453_v49 }
 0x14c   :  { %v720_v13 = vadd.f32 %v714_v8, %v708_v7  ;;  %v709_v14 = vmul.f32 %v649_v9, %v649_v9  ;;  %v715_v15 = vmul.f32 %v700_v10, %v700_v10  ;;  %vm738_vm6 = vcmp.eq.f32.partialorder %v718_v3, inf }
 0x14d   :  { %1238 = vrsqrt.f32 %v719_v11  ;;  %v651_v16 = vpop.f32.mrf.mxu0  ;;  %v702_v17 = vpop.f32.mrf.mxu1  ;;  %vm745_vm4 = vcmp.eq.f32.partialorder %v719_v11, inf  ;;  %vm747_vm5 = vcmp.eq.f32.partialorder %v719_v11, 0.0  ;;  %v748_v28 = vand.u32 2147483648, %v719_v11 }
 0x14e   :  { %1240 = vrsqrt.f32 %v720_v13  ;;  %v721_v18 = vadd.f32 %v715_v15, %v709_v14  ;;  %v741_v33 = vand.u32 2147483648, %v718_v3  ;;  %vm740_vm7 = vcmp.eq.f32.partialorder %v718_v3, 0.0 }
 0x14f   :  { %vm752_vm8 = vcmp.eq.f32.partialorder %v720_v13, inf  ;;  %vm754_vm9 = vcmp.eq.f32.partialorder %v720_v13, 0.0  ;;  %v755_v39 = vand.u32 2147483648, %v720_v13 }
 0x150   :  { %1242 = vrsqrt.f32 %v721_v18  ;;  %vm759_vm10 = vcmp.eq.f32.partialorder %v721_v18, inf  ;;  %v762_v46 = vand.u32 2147483648, %v721_v18  ;;  %vm761_vm11 = vcmp.eq.f32.partialorder %v721_v18, 0.0 }
 0x153   :  { %v1233_v19 = vpop.eup %1232 }
 0x154   :  { %v723_v23 = vmul.f32 %v1233_v19, %v1453_v49 }
 0x155   :  { %v1235_v20 = vpop.eup %1234 }
 0x156   :  { %v730_v21 = vmul.f32 %v1235_v20, %v1455_v56  ;;  %v725_v34 = vsel %vm724_vm1, %v1453_v49, %v723_v23 }
 0x157   :  { %v728_v45 = vsel %vm726_vm2, %v727_v25, %v725_v34 }
 0x158   :  { %v1237_v22 = vpop.eup %1236  ;;  %v732_v30 = vsel %vm731_vm0, %v1455_v56, %v730_v21 }
 0x159   :  { %v737_v26 = vmul.f32 %v1237_v22, %v718_v3  ;;  %v735_v40 = vsel %vm733_vm3, %v734_v24, %v732_v30 }
 0x15a   :  { %v1239_v27 = vpop.eup %1238 }
 0x15b   :  { %v1241_v29 = vpop.eup %1240  ;;  %v744_v31 = vmul.f32 %v1239_v27, %v719_v11  ;;  %v739_v32 = vsel %vm738_vm6, %v718_v3, %v737_v26 }
 0x15c   :  { %v751_v35 = vmul.f32 %v1241_v29, %v720_v13  ;;  %v742_v38 = vsel %vm740_vm7, %v741_v33, %v739_v32 }
 0x15d   :  { %v1243_v36 = vpop.eup %1242  ;;  %v746_v37 = vsel %vm745_vm4, %v719_v11, %v744_v31  ;;  %v764_v47 = vpack.c.bf16 %v742_v38, %v728_v45 }
 0x15e   :  { %v749_v41 = vsel %vm747_vm5, %v748_v28, %v746_v37  ;;  %v758_v42 = vmul.f32 %v1243_v36, %v721_v18  ;;  %v753_v43 = vsel %vm752_vm8, %v720_v13, %v751_v35 }
 0x15f   :  { %v765_v44 = vpack.c.bf16 %v749_v41, %v735_v40  ;;  %v756_v50 = vsel %vm754_vm9, %v755_v39, %v753_v43 }
 0x160   :  { %v760_v48 = vsel %vm759_vm10, %v721_v18, %v758_v42  ;;  %v766_v53 = vpack.c.bf16 %v756_v50, %v756_v50 }
 0x161   :  { %928 = vmatprep.mubr.bf16.mxu0 %v765_v44  ;;  %v763_v51 = vsel %vm761_vm11, %v762_v46, %v760_v48 }
 0x162   :  { %929 = vmatmul.mubr.bf16.vlgmr.msra.gmra.mxu0 %v764_v47  ;;  %v767_v52 = vpack.c.bf16 %v763_v51, %v763_v51 }
 0x164   :  { %936 = vmatprep.mubr.bf16.mxu1 %v767_v52 }
 0x165   :  { %937 = vmatmul.mubr.bf16.vlgmr.msra.gmra.mxu1 %v766_v53 }
 0x222   :  { %v1075_v54 = vpop.f32.mrf.mxu0 }
 0x224   :  { %v1076_v55 = vpop.f32.mrf.mxu0 }
 0x225   :  { %v1077_v56 = vadd.f32 %v1076_v55, %v1075_v54  ;;  %v1081_v57 = vpop.f32.mrf.mxu1 }
 0x226   :  { %v1078_v58 = vpop.f32.mrf.mxu0 }
 0x227   :  { %v944_v49 = vmax.f32 %v1077_v56, 0.001  ;;  %v1082_v59 = vpop.f32.mrf.mxu1 }
 0x228   :  { %v1079_v60 = vpop.f32.mrf.mxu0  ;;  %v1083_v61 = vadd.f32 %v1082_v59, %v1081_v57 }
 0x229   :  { %1244 = vlog2.f32 %v944_v49  ;;  %v1080_v62 = vadd.f32 %v1079_v60, %v1078_v58  ;;  %v1084_v63 = vpop.f32.mrf.mxu1 }
 0x22a   :  { %v946_v1 = vmax.f32 %v1083_v61, 0.001 }
 0x22b   :  { %v945_v2 = vmax.f32 %v1080_v62, 0.001  ;;  %v1085_v3 = vpop.f32.mrf.mxu1 }
 0x22c   :  { %1246 = vlog2.f32 %v946_v1 }
 0x22d   :  { %1248 = vlog2.f32 %v945_v2 }
 0x236   :  { %v1245_v4 = vpop.eup %1244 }
 0x237   :  { %v948_v5 = vmul.f32 0.6931472, %v1245_v4 }
 0x239   :  { %v1247_v6 = vpop.eup %1246  ;;  %953 = vst [vmem:[#allocation11] sm:$0xff] %v948_v5 }
 0x23a   :  { %v1249_v7 = vpop.eup %1248  ;;  %v952_v8 = vmul.f32 0.6931472, %v1247_v6 }
 0x23b   :  { %v950_v9 = vmul.f32 0.6931472, %v1249_v7 }
 0x23c   :  { %955 = vst [vmem:[#allocation11 + $0x10] sm:$0xff] %v952_v8 }
 0x23d   :  { %954 = vst [vmem:[#allocation11 + $0x8] sm:$0xff] %v950_v9 }
 0x23e   :  { %1361 = shalt.err (!%p1358_p1)
}
 0x23f   :  { %s1389_s20 = smov 128   ;;  %s1390_s21 = smov 8  }
 0x240   :  { %967 = dma.vmem_to_hbm [thread:$0]  %s962_s4, 384, %s1484_s5, [#allocation4], %s1389_s20, %s1389_s20, %s1390_s21  }
 0x241   :  { %1376 = dma.done.wait [#allocation4], 384  }
 0x242   :  { %1377 = vsyncadd [#allocation4], 4294966912 }
 0x243   :  { %971 = vsyncpa [#allocation3], 1 }
 0x244   :  { %972 = vsyncpa [#allocation6], 1 }
 0x245   :  { %973 = vsyncpa [#allocation9], 1 }
 0x246   :  { %974 = vsyncpa [#allocation4], 1 }

</bundles_post_ra>
